<compile_context>
chip_gen: v5e
topology: v5e:2x2
jax: 0.10.0
libtpu: 0.0.40
codegen_flags: <defaults>
</compile_context>

<pallas_src>
import functools
import math

import jax
import jax.numpy as jnp
from jax import lax
from jax.experimental import pallas as pl
from jax.experimental.pallas import tpu as pltpu

LOG2 = math.log(2.0)


def _round_up(x, m):
    return ((x + m - 1) // m) * m


# ---------------------------------------------------------------------------
# single fused kernel: FF_global + FF_local + JSD loss + PriorDiscriminator
# ---------------------------------------------------------------------------
def gcn_infomax_kernel(emb_ref, feat_ref, adjt_ref, noise_ref,
                       ffw0_ref, ffw1_ref, ffw2_ref, ffb_ref,
                       pw01_ref, psm_ref,
                       loss_ref, xin_ref,
                       *, gamma, prior, eps):
    # static dims derived from ref shapes
    D, dg = emb_ref.shape                      # num_drugs, embedding_dim (= h3)
    N, dl = feat_ref.shape                     # num_nodes, features_dim
    M = D + N
    Kin = xin_ref.shape[1]
    off_l = Kin - dl                           # local input block starts at lane 128*k
    R = ffw1_ref.shape[0]                      # fused ReLU region width (mult of 128)
    H1 = ffw1_ref.shape[1]                     # 2*h2
    H2 = ffw2_ref.shape[1]                     # 2*h3p
    h3p = H2 // 2                              # per-FF padded output width (mult of 128)
    h3 = dg

    # ---- assemble block-stacked FF input [emb ; feat] in VMEM (no wrapper concat) ----
    xin_ref[...] = jnp.zeros_like(xin_ref)
    xin_ref[0:D, 0:dg] = emb_ref[...]                       # lane offset 0 (aligned)
    xin_ref[D:M, off_l:off_l + dl] = feat_ref[...]          # lane offset 128 (aligned)
    x = xin_ref[...].astype(jnp.bfloat16)

    # ---- FF_global + FF_local as 3 block-diagonal matmuls (shortcut fused in layer 0) --
    ffb = ffb_ref[...]
    b0 = ffb[0:1, :]                                        # (1, L0)
    b1 = ffb[1:2, 0:H1]
    b2 = ffb[2:3, 0:H2]

    h0 = jnp.dot(x, ffw0_ref[...], preferred_element_type=jnp.float32) + b0
    relu0 = jnp.maximum(h0[:, 0:R], 0.0)                    # aligned slice
    shortcut = h0[:, R:R + H2]                              # aligned slice
    a1 = jnp.maximum(
        jnp.dot(relu0.astype(jnp.bfloat16), ffw1_ref[...],
                preferred_element_type=jnp.float32) + b1, 0.0)
    a2 = jnp.maximum(
        jnp.dot(a1.astype(jnp.bfloat16), ffw2_ref[...],
                preferred_element_type=jnp.float32) + b2, 0.0)
    ff_out = a2 + shortcut                                  # (M, 2*h3p)

    # padded lanes (cols >= h3 inside each block) are exactly zero by construction,
    # so contracting over the full h3p width reproduces g_enc @ l_enc^T exactly.
    g_enc = ff_out[0:D, 0:h3p]                              # (D, h3p)
    l_enc = ff_out[D:M, h3p:2 * h3p]                        # (N, h3p)

    # ---- JSD local/global loss, lane-dense res of shape (D, N) ----
    res = lax.dot_general(g_enc.astype(jnp.bfloat16), l_enc.astype(jnp.bfloat16),
                          (((1,), (1,)), ((), ())),
                          preferred_element_type=jnp.float32)   # (D, N)
    mask = adjt_ref[...]                                    # (D, N)
    sp = jnp.maximum(-res, 0.0) + jnp.log(1.0 + jnp.exp(-jnp.abs(res)))  # softplus(-res)
    e_pos = mask * (LOG2 - sp)                              # 0 on negative entries
    e_neg = (1.0 - mask) * (sp + res - LOG2)                # 0 on positive entries
    n_pos = jnp.sum(mask)
    n_neg = float(N * D) - n_pos
    lg_loss = (jnp.sum(e_neg) / jnp.maximum(n_neg, 1.0)
               - jnp.sum(e_pos) / jnp.maximum(n_pos, 1.0))

    if prior:
        psm = psm_ref[...]                                  # (4, h3) packed small params
        pb0 = psm[0:1, :]
        pb1 = psm[1:2, :]
        pw2 = psm[2:3, :]                                   # final layer weight as a row
        pb2 = psm[3:4, 0:1]
        # batch [prior_noise ; embeddings] -> one MLP pass
        xp = jnp.concatenate([noise_ref[...], emb_ref[...]], axis=0).astype(jnp.bfloat16)
        h = jnp.maximum(
            jnp.dot(xp, pw01_ref[0:h3, :],
                    preferred_element_type=jnp.float32) + pb0, 0.0)
        h = jnp.maximum(
            jnp.dot(h.astype(jnp.bfloat16), pw01_ref[h3:2 * h3, :],
                    preferred_element_type=jnp.float32) + pb1, 0.0)
        # (h3 -> 1) layer on VPU + XLU lane-reduce instead of a 1-lane MXU pass
        logits = jnp.sum(h * pw2, axis=-1, keepdims=True) + pb2        # (2D, 1)
        sig = 0.5 * (jnp.tanh(0.5 * logits) + 1.0)
        row = lax.broadcasted_iota(jnp.int32, sig.shape, 0)
        vals = jnp.where(row < D, sig, 1.0 - sig)           # term_a rows / term_b rows
        prior_term = -(jnp.sum(jnp.log(vals + eps)) / float(D)) * gamma
        loss = lg_loss + prior_term
    else:
        loss = lg_loss

    loss_ref[0, 0] = loss


# ---------------------------------------------------------------------------
# GcnInfomax forward (one pallas_call)
# ---------------------------------------------------------------------------
@functools.partial(jax.jit, static_argnames=("num_drugs", "prior", "gamma"))
def gcn_infomax_forward(packed, embeddings, features, adj_tensor, prior_noise,
                        *, num_drugs, prior=True, gamma=0.1):
    assert embeddings.shape[0] == num_drugs
    D, _ = embeddings.shape
    N, _ = features.shape
    M = D + N
    Kin = packed["ffw0"].shape[0]

    kernel = functools.partial(gcn_infomax_kernel, gamma=gamma, prior=prior, eps=1e-5)
    vmem = pl.BlockSpec(memory_space=pltpu.MemorySpace.VMEM)

    loss = pl.pallas_call(
        kernel,
        out_shape=jax.ShapeDtypeStruct((1, 1), jnp.float32),
        in_specs=[vmem] * 10,
        out_specs=pl.BlockSpec(memory_space=pltpu.MemorySpace.SMEM),
        scratch_shapes=[pltpu.VMEM((M, Kin), jnp.float32)],
    )(embeddings, features, adj_tensor.T, prior_noise,
      packed["ffw0"], packed["ffw1"], packed["ffw2"], packed["ffb"],
      packed["pw01"], packed["psm"])
    return loss[0, 0]


# ---------------------------------------------------------------------------
# Parameter init (deterministic, synthetic) + block-diagonal packing
# ---------------------------------------------------------------------------
def _linear(key, d_in, d_out):
    kw, kb = jax.random.split(key)
    w = jax.random.normal(kw, (d_in, d_out), jnp.float32) * (1.0 / math.sqrt(d_in))
    b = jax.random.normal(kb, (d_out,), jnp.float32) * 0.01
    return w, b


def init_ff_raw(key, d_in, h1, h2, h3):
    k0, k1, k2, ks = jax.random.split(key, 4)
    w0, b0 = _linear(k0, d_in, h1)
    w1, b1 = _linear(k1, h1, h2)
    w2, b2 = _linear(k2, h2, h3)
    ws, bs = _linear(ks, d_in, h3)        # shortcut Linear
    return dict(w0=w0, b0=b0, w1=w1, b1=b1, w2=w2, b2=b2, ws=ws, bs=bs)


def init_prior_raw(key, dim):
    k0, k1, k2 = jax.random.split(key, 3)
    w0, b0 = _linear(k0, dim, dim)
    w1, b1 = _linear(k1, dim, dim)
    w2, b2 = _linear(k2, dim, 1)
    return dict(w0=w0, b0=b0, w1=w1, b1=b1, w2=w2, b2=b2)


def pack_params(gp, lp, pp, d_g, d_l, h1, h2, h3):
    """Pack FF_global/FF_local into block-diagonal, lane-aligned weights (done once)."""
    R = _round_up(2 * h1, 128)            # fused ReLU region width
    h3p = _round_up(h3, 128)              # per-FF output block width
    off_l = _round_up(d_g, 128)           # local input block column offset
    Kin = off_l + d_l
    L0 = R + 2 * h3p
    H1 = 2 * h2
    H2 = 2 * h3p

    # layer 0 (+ shortcut): columns = [g_relu | l_relu | pad | g_short(pad128) | l_short(pad128)]
    w0 = jnp.zeros((Kin, L0), jnp.float32)
    w0 = w0.at[0:d_g, 0:h1].set(gp["w0"])
    w0 = w0.at[off_l:off_l + d_l, h1:2 * h1].set(lp["w0"])
    w0 = w0.at[0:d_g, R:R + h3].set(gp["ws"])
    w0 = w0.at[off_l:off_l + d_l, R + h3p:R + h3p + h3].set(lp["ws"])

    w1 = jnp.zeros((R, H1), jnp.float32)
    w1 = w1.at[0:h1, 0:h2].set(gp["w1"])
    w1 = w1.at[h1:2 * h1, h2:2 * h2].set(lp["w1"])

    w2 = jnp.zeros((H1, H2), jnp.float32)
    w2 = w2.at[0:h2, 0:h3].set(gp["w2"])
    w2 = w2.at[h2:2 * h2, h3p:h3p + h3].set(lp["w2"])

    ffb = jnp.zeros((3, L0), jnp.float32)
    ffb = ffb.at[0, 0:h1].set(gp["b0"])
    ffb = ffb.at[0, h1:2 * h1].set(lp["b0"])
    ffb = ffb.at[0, R:R + h3].set(gp["bs"])
    ffb = ffb.at[0, R + h3p:R + h3p + h3].set(lp["bs"])
    ffb = ffb.at[1, 0:h2].set(gp["b1"])
    ffb = ffb.at[1, h2:2 * h2].set(lp["b1"])
    ffb = ffb.at[2, 0:h3].set(gp["b2"])
    ffb = ffb.at[2, h3p:h3p + h3].set(lp["b2"])

    # prior discriminator: row-stack the two square weights; pack small params
    pw01 = jnp.concatenate([pp["w0"], pp["w1"]], axis=0)      # (2*h3, h3)
    psm = jnp.zeros((4, h3), jnp.float32)
    psm = psm.at[0].set(pp["b0"])
    psm = psm.at[1].set(pp["b1"])
    psm = psm.at[2].set(pp["w2"][:, 0])                       # final weight as a row
    psm = psm.at[3, 0].set(pp["b2"][0])

    return dict(ffw0=w0.astype(jnp.bfloat16),
                ffw1=w1.astype(jnp.bfloat16),
                ffw2=w2.astype(jnp.bfloat16),
                ffb=ffb,
                pw01=pw01.astype(jnp.bfloat16),
                psm=psm)


if __name__ == "__main__":
    # args: hidden_size=32 (features_dim), gcn_hidden1=64, gcn_hidden2=48,
    #       gcn_hidden3=32 (embedding_dim), prior=True, gamma=0.1
    hidden_size, h1, h2, h3 = 32, 64, 48, 32
    num_nodes, num_drugs = 16, 8

    key = jax.random.PRNGKey(0)
    k_lp, k_gp, k_pp, k_emb, k_feat, k_adj, k_noise = jax.random.split(key, 7)

    local_raw = init_ff_raw(k_lp, hidden_size, h1, h2, h3)    # FF_local
    global_raw = init_ff_raw(k_gp, h3, h1, h2, h3)            # FF_global
    prior_raw = init_prior_raw(k_pp, h3)                      # PriorDiscriminator
    packed = pack_params(global_raw, local_raw, prior_raw,
                         d_g=h3, d_l=hidden_size, h1=h1, h2=h2, h3=h3)

    embeddings = jax.random.normal(k_emb, (num_drugs, h3), jnp.float32)
    features = jax.random.normal(k_feat, (num_nodes, hidden_size), jnp.float32)
    adj_tensor = (jax.random.uniform(k_adj, (num_nodes, num_drugs)) < 0.3
                  ).astype(jnp.float32)
    # stand-in for torch.rand_like(embeddings)
    prior_noise = jax.random.uniform(k_noise, (num_drugs, h3), jnp.float32)

    loss = gcn_infomax_forward(packed, embeddings, features, adj_tensor, prior_noise,
                               num_drugs=num_drugs, prior=True, gamma=0.1)
    loss = jax.block_until_ready(loss)
    assert loss.shape == () and jnp.isfinite(loss)
    print("KERNEL_OK")
</pallas_src>

<mosaic_0001>
module attributes {stable_mosaic.version = 11 : i64} {
  func.func @gcn_infomax_kernel(%arg0: memref<8x32xf32, #tpu.memory_space<vmem>>, %arg1: memref<16x32xf32, #tpu.memory_space<vmem>>, %arg2: memref<8x16xf32, #tpu.memory_space<vmem>>, %arg3: memref<8x32xf32, #tpu.memory_space<vmem>>, %arg4: memref<160x384xbf16, #tpu.memory_space<vmem>>, %arg5: memref<128x96xbf16, #tpu.memory_space<vmem>>, %arg6: memref<96x256xbf16, #tpu.memory_space<vmem>>, %arg7: memref<3x384xf32, #tpu.memory_space<vmem>>, %arg8: memref<64x32xbf16, #tpu.memory_space<vmem>>, %arg9: memref<4x32xf32, #tpu.memory_space<vmem>>, %arg10: memref<1x1xf32, #tpu.memory_space<smem>>, %arg11: memref<24x160xf32, #tpu.memory_space<vmem>>) attributes {dimension_semantics = [], scalar_prefetch = 0 : i64, scratch_operands = 1 : i64, tpu.core_type = #tpu.core_type<tc>} {
    %cst = arith.constant 0.000000e+00 : f32
    %0 = vector.broadcast %cst : f32 to vector<24x160xf32>
    %c0 = arith.constant 0 : index
    %c0_0 = arith.constant 0 : index
    %1 = vector.load %arg11[%c0, %c0_0] : memref<24x160xf32, #tpu.memory_space<vmem>>, vector<24x160xf32>
    tpu.vector_store %arg11[%c0, %c0_0], %0 {strides = array<i32>} : memref<24x160xf32, #tpu.memory_space<vmem>>, vector<24x160xf32>,
    %c0_1 = arith.constant 0 : index
    %c0_2 = arith.constant 0 : index
    %2 = vector.load %arg0[%c0_1, %c0_2] : memref<8x32xf32, #tpu.memory_space<vmem>>, vector<8x32xf32>
    %c0_3 = arith.constant 0 : index
    %c0_4 = arith.constant 0 : index
    %3 = vector.load %arg11[%c0_3, %c0_4] : memref<24x160xf32, #tpu.memory_space<vmem>>, vector<8x32xf32>
    tpu.vector_store %arg11[%c0_3, %c0_4], %2 {strides = array<i32>} : memref<24x160xf32, #tpu.memory_space<vmem>>, vector<8x32xf32>,
    %c0_5 = arith.constant 0 : index
    %c0_6 = arith.constant 0 : index
    %4 = vector.load %arg1[%c0_5, %c0_6] : memref<16x32xf32, #tpu.memory_space<vmem>>, vector<16x32xf32>
    %c8 = arith.constant 8 : index
    %c128 = arith.constant 128 : index
    %5 = vector.load %arg11[%c8, %c128] : memref<24x160xf32, #tpu.memory_space<vmem>>, vector<16x32xf32>
    tpu.vector_store %arg11[%c8, %c128], %4 {strides = array<i32>} : memref<24x160xf32, #tpu.memory_space<vmem>>, vector<16x32xf32>,
    %c0_7 = arith.constant 0 : index
    %c0_8 = arith.constant 0 : index
    %6 = vector.load %arg11[%c0_7, %c0_8] : memref<24x160xf32, #tpu.memory_space<vmem>>, vector<24x160xf32>
    %7 = arith.truncf %6 : vector<24x160xf32> to vector<24x160xbf16>
    %c0_9 = arith.constant 0 : index
    %c0_10 = arith.constant 0 : index
    %8 = vector.load %arg7[%c0_9, %c0_10] : memref<3x384xf32, #tpu.memory_space<vmem>>, vector<3x384xf32>
    %9 = vector.extract_strided_slice %8 {offsets = [0, 0], sizes = [1, 384], strides = [1, 1]} : vector<3x384xf32> to vector<1x384xf32>
    %10 = vector.extract_strided_slice %8 {offsets = [1, 0], sizes = [1, 96], strides = [1, 1]} : vector<3x384xf32> to vector<1x96xf32>
    %11 = vector.extract_strided_slice %8 {offsets = [2, 0], sizes = [1, 256], strides = [1, 1]} : vector<3x384xf32> to vector<1x256xf32>
    %c0_11 = arith.constant 0 : index
    %c0_12 = arith.constant 0 : index
    %12 = vector.load %arg4[%c0_11, %c0_12] : memref<160x384xbf16, #tpu.memory_space<vmem>>, vector<160x384xbf16>
    %cst_13 = arith.constant dense<0.000000e+00> : vector<24x384xf32>
    %13 = tpu.matmul %7, %12, %cst_13 {dimension_numbers = #tpu.dot_dimension_numbers<[1], [0], [0], [1], [0, 0, 1, 1], [], []>} : vector<24x160xbf16>, vector<160x384xbf16>, vector<24x384xf32> -> vector<24x384xf32>
    %14 = vector.broadcast %9 : vector<1x384xf32> to vector<24x384xf32>
    %15 = arith.addf %13, %14 : vector<24x384xf32>
    %16 = vector.extract_strided_slice %15 {offsets = [0, 0], sizes = [24, 128], strides = [1, 1]} : vector<24x384xf32> to vector<24x128xf32>
    %cst_14 = arith.constant 0.000000e+00 : f32
    %17 = vector.broadcast %cst_14 : f32 to vector<24x128xf32>
    %18 = arith.maximumf %16, %17 : vector<24x128xf32>
    %19 = vector.extract_strided_slice %15 {offsets = [0, 128], sizes = [24, 256], strides = [1, 1]} : vector<24x384xf32> to vector<24x256xf32>
    %20 = arith.truncf %18 : vector<24x128xf32> to vector<24x128xbf16>
    %c0_15 = arith.constant 0 : index
    %c0_16 = arith.constant 0 : index
    %21 = vector.load %arg5[%c0_15, %c0_16] : memref<128x96xbf16, #tpu.memory_space<vmem>>, vector<128x96xbf16>
    %cst_17 = arith.constant dense<0.000000e+00> : vector<24x96xf32>
    %22 = tpu.matmul %20, %21, %cst_17 {dimension_numbers = #tpu.dot_dimension_numbers<[1], [0], [0], [1], [0, 0, 1, 1], [], []>} : vector<24x128xbf16>, vector<128x96xbf16>, vector<24x96xf32> -> vector<24x96xf32>
    %23 = vector.broadcast %10 : vector<1x96xf32> to vector<24x96xf32>
    %24 = arith.addf %22, %23 : vector<24x96xf32>
    %cst_18 = arith.constant 0.000000e+00 : f32
    %25 = vector.broadcast %cst_18 : f32 to vector<24x96xf32>
    %26 = arith.maximumf %24, %25 : vector<24x96xf32>
    %27 = arith.truncf %26 : vector<24x96xf32> to vector<24x96xbf16>
    %c0_19 = arith.constant 0 : index
    %c0_20 = arith.constant 0 : index
    %28 = vector.load %arg6[%c0_19, %c0_20] : memref<96x256xbf16, #tpu.memory_space<vmem>>, vector<96x256xbf16>
    %cst_21 = arith.constant dense<0.000000e+00> : vector<24x256xf32>
    %29 = tpu.matmul %27, %28, %cst_21 {dimension_numbers = #tpu.dot_dimension_numbers<[1], [0], [0], [1], [0, 0, 1, 1], [], []>} : vector<24x96xbf16>, vector<96x256xbf16>, vector<24x256xf32> -> vector<24x256xf32>
    %30 = vector.broadcast %11 : vector<1x256xf32> to vector<24x256xf32>
    %31 = arith.addf %29, %30 : vector<24x256xf32>
    %cst_22 = arith.constant 0.000000e+00 : f32
    %32 = vector.broadcast %cst_22 : f32 to vector<24x256xf32>
    %33 = arith.maximumf %31, %32 : vector<24x256xf32>
    %34 = arith.addf %33, %19 : vector<24x256xf32>
    %35 = vector.extract_strided_slice %34 {offsets = [0, 0], sizes = [8, 128], strides = [1, 1]} : vector<24x256xf32> to vector<8x128xf32>
    %36 = vector.extract_strided_slice %34 {offsets = [8, 128], sizes = [16, 128], strides = [1, 1]} : vector<24x256xf32> to vector<16x128xf32>
    %37 = arith.truncf %35 : vector<8x128xf32> to vector<8x128xbf16>
    %38 = arith.truncf %36 : vector<16x128xf32> to vector<16x128xbf16>
    %cst_23 = arith.constant dense<0.000000e+00> : vector<8x16xf32>
    %39 = tpu.matmul %37, %38, %cst_23 {dimension_numbers = #tpu.dot_dimension_numbers<[1], [1], [0], [0], [0, 0, 1, 0], [], []>} : vector<8x128xbf16>, vector<16x128xbf16>, vector<8x16xf32> -> vector<8x16xf32>
    %c0_24 = arith.constant 0 : index
    %c0_25 = arith.constant 0 : index
    %40 = vector.load %arg2[%c0_24, %c0_25] : memref<8x16xf32, #tpu.memory_space<vmem>>, vector<8x16xf32>
    %cst_26 = arith.constant 0.000000e+00 : f32
    %41 = vector.broadcast %cst_26 : f32 to vector<8x16xf32>
    %42 = arith.subf %41, %39 : vector<8x16xf32>
    %cst_27 = arith.constant 0.000000e+00 : f32
    %43 = vector.broadcast %cst_27 : f32 to vector<8x16xf32>
    %44 = arith.maximumf %42, %43 : vector<8x16xf32>
    %45 = math.absf %39 : vector<8x16xf32>
    %cst_28 = arith.constant 0.000000e+00 : f32
    %46 = vector.broadcast %cst_28 : f32 to vector<8x16xf32>
    %47 = arith.subf %46, %45 : vector<8x16xf32>
    %48 = math.exp %47 : vector<8x16xf32>
    %cst_29 = arith.constant 1.000000e+00 : f32
    %49 = vector.broadcast %cst_29 : f32 to vector<8x16xf32>
    %50 = arith.addf %49, %48 : vector<8x16xf32>
    %51 = math.log %50 : vector<8x16xf32>
    %52 = arith.addf %44, %51 : vector<8x16xf32>
    %cst_30 = arith.constant 0.693147182 : f32
    %53 = vector.broadcast %cst_30 : f32 to vector<8x16xf32>
    %54 = arith.subf %53, %52 : vector<8x16xf32>
    %55 = arith.mulf %40, %54 : vector<8x16xf32>
    %cst_31 = arith.constant 1.000000e+00 : f32
    %56 = vector.broadcast %cst_31 : f32 to vector<8x16xf32>
    %57 = arith.subf %56, %40 : vector<8x16xf32>
    %58 = arith.addf %52, %39 : vector<8x16xf32>
    %cst_32 = arith.constant 0.693147182 : f32
    %59 = vector.broadcast %cst_32 : f32 to vector<8x16xf32>
    %60 = arith.subf %58, %59 : vector<8x16xf32>
    %61 = arith.mulf %57, %60 : vector<8x16xf32>
    %62 = vector.shape_cast %40 : vector<8x16xf32> to vector<1x8x16xf32>
    %cst_33 = arith.constant dense<0.000000e+00> : vector<1xf32>
    %63 = vector.multi_reduction <add>, %62, %cst_33 [1, 2] : vector<1x8x16xf32> to vector<1xf32>
    %64 = vector.shape_cast %63 : vector<1xf32> to vector<1x1x1xf32>
    %65 = vector.extract %64[0, 0, 0] : f32 from vector<1x1x1xf32>
    %cst_34 = arith.constant 1.280000e+02 : f32
    %66 = arith.subf %cst_34, %65 : f32
    %67 = vector.shape_cast %61 : vector<8x16xf32> to vector<1x8x16xf32>
    %cst_35 = arith.constant dense<0.000000e+00> : vector<1xf32>
    %68 = vector.multi_reduction <add>, %67, %cst_35 [1, 2] : vector<1x8x16xf32> to vector<1xf32>
    %69 = vector.shape_cast %68 : vector<1xf32> to vector<1x1x1xf32>
    %70 = vector.extract %69[0, 0, 0] : f32 from vector<1x1x1xf32>
    %cst_36 = arith.constant 1.000000e+00 : f32
    %71 = arith.maximumf %66, %cst_36 : f32
    %72 = arith.divf %70, %71 : f32
    %73 = vector.shape_cast %55 : vector<8x16xf32> to vector<1x8x16xf32>
    %cst_37 = arith.constant dense<0.000000e+00> : vector<1xf32>
    %74 = vector.multi_reduction <add>, %73, %cst_37 [1, 2] : vector<1x8x16xf32> to vector<1xf32>
    %75 = vector.shape_cast %74 : vector<1xf32> to vector<1x1x1xf32>
    %76 = vector.extract %75[0, 0, 0] : f32 from vector<1x1x1xf32>
    %cst_38 = arith.constant 1.000000e+00 : f32
    %77 = arith.maximumf %65, %cst_38 : f32
    %78 = arith.divf %76, %77 : f32
    %79 = arith.subf %72, %78 : f32
    %c0_39 = arith.constant 0 : index
    %c0_40 = arith.constant 0 : index
    %80 = vector.load %arg9[%c0_39, %c0_40] : memref<4x32xf32, #tpu.memory_space<vmem>>, vector<4x32xf32>
    %81 = vector.extract_strided_slice %80 {offsets = [0, 0], sizes = [1, 32], strides = [1, 1]} : vector<4x32xf32> to vector<1x32xf32>
    %82 = vector.extract_strided_slice %80 {offsets = [1, 0], sizes = [1, 32], strides = [1, 1]} : vector<4x32xf32> to vector<1x32xf32>
    %83 = vector.extract_strided_slice %80 {offsets = [2, 0], sizes = [1, 32], strides = [1, 1]} : vector<4x32xf32> to vector<1x32xf32>
    %84 = vector.extract_strided_slice %80 {offsets = [3, 0], sizes = [1, 1], strides = [1, 1]} : vector<4x32xf32> to vector<1x1xf32>
    %c0_41 = arith.constant 0 : index
    %c0_42 = arith.constant 0 : index
    %85 = vector.load %arg3[%c0_41, %c0_42] : memref<8x32xf32, #tpu.memory_space<vmem>>, vector<8x32xf32>
    %c0_43 = arith.constant 0 : index
    %c0_44 = arith.constant 0 : index
    %86 = vector.load %arg0[%c0_43, %c0_44] : memref<8x32xf32, #tpu.memory_space<vmem>>, vector<8x32xf32>
    %87 = tpu.concatenate %85, %86 in 0 : vector<8x32xf32>, vector<8x32xf32> -> vector<16x32xf32>
    %88 = arith.truncf %87 : vector<16x32xf32> to vector<16x32xbf16>
    %c0_45 = arith.constant 0 : index
    %c0_46 = arith.constant 0 : index
    %89 = vector.load %arg8[%c0_45, %c0_46] : memref<64x32xbf16, #tpu.memory_space<vmem>>, vector<32x32xbf16>
    %cst_47 = arith.constant dense<0.000000e+00> : vector<16x32xf32>
    %90 = tpu.matmul %88, %89, %cst_47 {dimension_numbers = #tpu.dot_dimension_numbers<[1], [0], [0], [1], [0, 0, 1, 1], [], []>} : vector<16x32xbf16>, vector<32x32xbf16>, vector<16x32xf32> -> vector<16x32xf32>
    %91 = vector.broadcast %81 : vector<1x32xf32> to vector<16x32xf32>
    %92 = arith.addf %90, %91 : vector<16x32xf32>
    %cst_48 = arith.constant 0.000000e+00 : f32
    %93 = vector.broadcast %cst_48 : f32 to vector<16x32xf32>
    %94 = arith.maximumf %92, %93 : vector<16x32xf32>
    %95 = arith.truncf %94 : vector<16x32xf32> to vector<16x32xbf16>
    %c32 = arith.constant 32 : index
    %c0_49 = arith.constant 0 : index
    %96 = vector.load %arg8[%c32, %c0_49] : memref<64x32xbf16, #tpu.memory_space<vmem>>, vector<32x32xbf16>
    %cst_50 = arith.constant dense<0.000000e+00> : vector<16x32xf32>
    %97 = tpu.matmul %95, %96, %cst_50 {dimension_numbers = #tpu.dot_dimension_numbers<[1], [0], [0], [1], [0, 0, 1, 1], [], []>} : vector<16x32xbf16>, vector<32x32xbf16>, vector<16x32xf32> -> vector<16x32xf32>
    %98 = vector.broadcast %82 : vector<1x32xf32> to vector<16x32xf32>
    %99 = arith.addf %97, %98 : vector<16x32xf32>
    %cst_51 = arith.constant 0.000000e+00 : f32
    %100 = vector.broadcast %cst_51 : f32 to vector<16x32xf32>
    %101 = arith.maximumf %99, %100 : vector<16x32xf32>
    %102 = vector.broadcast %83 : vector<1x32xf32> to vector<16x32xf32>
    %103 = arith.mulf %101, %102 : vector<16x32xf32>
    %cst_52 = arith.constant dense<0.000000e+00> : vector<16xf32>
    %104 = vector.multi_reduction <add>, %103, %cst_52 [1] : vector<16x32xf32> to vector<16xf32>
    %105 = vector.shape_cast %104 : vector<16xf32> to vector<16x1xf32>
    %106 = vector.broadcast %84 : vector<1x1xf32> to vector<16x1xf32>
    %107 = arith.addf %105, %106 : vector<16x1xf32>
    %cst_53 = arith.constant 5.000000e-01 : f32
    %108 = vector.broadcast %cst_53 : f32 to vector<16x1xf32>
    %109 = arith.mulf %108, %107 : vector<16x1xf32>
    %110 = math.tanh %109 : vector<16x1xf32>
    %cst_54 = arith.constant 1.000000e+00 : f32
    %111 = vector.broadcast %cst_54 : f32 to vector<16x1xf32>
    %112 = arith.addf %110, %111 : vector<16x1xf32>
    %cst_55 = arith.constant 5.000000e-01 : f32
    %113 = vector.broadcast %cst_55 : f32 to vector<16x1xf32>
    %114 = arith.mulf %113, %112 : vector<16x1xf32>
    %115 = tpu.iota {dimensions = array<i32: 0>} : vector<16x1xi32>
    %c8_i32 = arith.constant 8 : i32
    %116 = vector.broadcast %c8_i32 : i32 to vector<16x1xi32>
    %117 = arith.cmpi slt, %115, %116 : vector<16x1xi32>
    %cst_56 = arith.constant 1.000000e+00 : f32
    %118 = vector.broadcast %cst_56 : f32 to vector<16x1xf32>
    %119 = arith.subf %118, %114 : vector<16x1xf32>
    %120 = arith.select %117, %114, %119 : vector<16x1xi1>, vector<16x1xf32>
    %cst_57 = arith.constant 9.99999974E-6 : f32
    %121 = vector.broadcast %cst_57 : f32 to vector<16x1xf32>
    %122 = arith.addf %120, %121 : vector<16x1xf32>
    %123 = math.log %122 : vector<16x1xf32>
    %124 = vector.shape_cast %123 : vector<16x1xf32> to vector<1x16x1xf32>
    %cst_58 = arith.constant dense<0.000000e+00> : vector<1xf32>
    %125 = vector.multi_reduction <add>, %124, %cst_58 [1, 2] : vector<1x16x1xf32> to vector<1xf32>
    %126 = vector.shape_cast %125 : vector<1xf32> to vector<1x1x1xf32>
    %127 = vector.extract %126[0, 0, 0] : f32 from vector<1x1x1xf32>
    %cst_59 = arith.constant 8.000000e+00 : f32
    %128 = arith.divf %127, %cst_59 : f32
    %cst_60 = arith.constant 0.000000e+00 : f32
    %129 = arith.subf %cst_60, %128 : f32
    %cst_61 = arith.constant 1.000000e-01 : f32
    %130 = arith.mulf %129, %cst_61 : f32
    %131 = arith.addf %79, %130 : f32
    %c0_62 = arith.constant 0 : index
    %c0_63 = arith.constant 0 : index
    %132 = memref.load %arg10[%c0_62, %c0_63] : memref<1x1xf32, #tpu.memory_space<smem>>
    memref.store %131, %arg10[%c0_62, %c0_63] : memref<1x1xf32, #tpu.memory_space<smem>>
    return
  }
}

</mosaic_0001>

<bundles_post_ra>
// kernel: gcn_infomax_forward.1
= control target key start
LH: loop header
LB: loop body
LE: loop exit
PB: predicated region body
PF: predicated region fallthrough
CT: control target
= control target key end

     0   :  { %15 = vsyncpa [#allocation4], 0  ;;  %s1672_s0 = inlined_call_operand.hbm [shape: f32[8,32], index: 0, kind: input, shape index: {}]   ;;  %s1673_s1 = inlined_call_operand.vmem [shape: f32[16,32], index: 1, kind: input, shape index: {}]   ;;  %s1674_s2 = inlined_call_operand.hbm [shape: f32[8,16], index: 2, kind: input, shape index: {}]   ;;  %s1675_s3 = inlined_call_operand.vmem [shape: f32[8,32], index: 3, kind: input, shape index: {}]   ;;  %s1676_s4 = inlined_call_operand.hbm [shape: bf16[160,384], index: 4, kind: input, shape index: {}]   ;;  %s1677_s5 = inlined_call_operand.vmem [shape: bf16[128,96], index: 5, kind: input, shape index: {}]   ;;  %s1678_s6 = inlined_call_operand.vmem [shape: bf16[96,256], index: 6, kind: input, shape index: {}]   ;;  %s1679_s7 = inlined_call_operand.hbm [shape: f32[3,384], index: 7, kind: input, shape index: {}]   ;;  %s1680_s8 = inlined_call_operand.vmem [shape: bf16[64,32], index: 8, kind: input, shape index: {}]   ;;  %s1681_s9 = inlined_call_operand.hbm [shape: f32[4,32], index: 9, kind: input, shape index: {}]   ;;  %s1682_s10 = inlined_call_operand.hbm [shape: f32[1,1], index: 10, kind: output, shape index: {}]  }
   0x1   :  { %16 = vsyncpa [#allocation7], 0 }
   0x2   :  { %17 = vsyncpa [#allocation10], 0  ;;  %s37_s15 = sshll.u32 %s1674_s2, 4  ;;  %s38_s15 = int_to_ptr.hbm [resolvable:$true] %s37_s15 }
   0x3   :  { %18 = vsyncpa [#allocation5], 0  ;;  %s1392_s16 = smov [#allocation6]   ;;  %s67_s20 = sshll.u32 %s1679_s7, 4  ;;  %s68_s20 = int_to_ptr.hbm [resolvable:$true] %s67_s20 }
   0x4   :  { %s39_s17 = sshll.u32 %s1392_s16, 4  ;;  %s1393_s21 = smov [#allocation9]   ;;  %s40_s17 = int_to_ptr.vmem [resolvable:$true] %s39_s17 }
   0x5   :  { %42 = dma.hbm_to_vmem [thread:$0]  %s38_s15, 128, %s40_s17, [#allocation7]  }
   0x6   :  { %s69_s22 = sshll.u32 %s1393_s21, 4  ;;  %s24_s25 = sshll.u32 %s1672_s0, 4  ;;  %s70_s22 = int_to_ptr.vmem [resolvable:$true] %s69_s22  ;;  %s25_s25 = int_to_ptr.hbm [resolvable:$true] %s24_s25 }
   0x7   :  { %72 = dma.hbm_to_vmem [thread:$0]  %s68_s20, 192, %s70_s22, [#allocation10]  }
   0x8   :  { %s49_s27 = sshll.u32 %s1676_s4, 4  ;;  %s1394_s28 = smov [#allocation3]   ;;  %s50_s27 = int_to_ptr.hbm [resolvable:$true] %s49_s27 }
   0x9   :  { %s26_s29 = sshll.u32 %s1394_s28, 4  ;;  %s1395_s7 = smov [#allocation8]   ;;  %s27_s29 = int_to_ptr.vmem [resolvable:$true] %s26_s29 }
   0xa   :  { %29 = dma.hbm_to_vmem [thread:$0]  %s25_s25, 128, %s27_s29, [#allocation4]  }
   0xb   :  { %s51_s30 = sshll.u32 %s1395_s7, 4  ;;  %s1396_s11 = smov 192   ;;  %s52_s30 = int_to_ptr.vmem [resolvable:$true] %s51_s30 }
   0xc   :  { %s1397_s12 = smov 12   ;;  %s80_s14 = sshll.u32 %s1681_s9, 4  ;;  %s81_s14 = int_to_ptr.hbm [resolvable:$true] %s80_s14 }
   0xd   :  { %57 = dma.hbm_to_vmem [thread:$0]  %s50_s27, 3840, %s52_s30, [#allocation7], %s1396_s11, %s1396_s11, %s1397_s12  }
   0xe   :  { %s1398_s15 = smov [#allocation11]  }
   0xf   :  { %s82_s16 = sshll.u32 %s1398_s15, 4  ;;  %s83_s16 = int_to_ptr.vmem [resolvable:$true] %s82_s16 }
  0x10   :  { %85 = dma.hbm_to_vmem [thread:$0]  %s81_s14, 64, %s83_s16, [#allocation10]  }
  0x11   :  { %1384 = dma.done.wait [#allocation4], 128  }
  0x12   :  { %1385 = vsyncadd [#allocation4], 4294967168 }
  0x13   :  { %1386 = dma.done.wait [#allocation7], 3968  }
  0x14   :  { %1387 = vsyncadd [#allocation7], 4294963328 }
  0x15   :  { %1388 = dma.done.wait [#allocation10], 256  }
  0x16   :  { %1389 = vsyncadd [#allocation10], 4294967040  ;;  %vm108_vm0 = vcmask 261120   ;;  %v1399_v0 = vmov 0.0   ;;  %v1012_v1 = vld [vmem:[#allocation8 + $0xa8] sm:$0xf] }
  0x17   :  { %109 = vst.msk [vmem:[#allocation2 + $0x8] sm:$0xff] %vm108_vm0, %v1399_v0  ;;  %v1177_v2 = vld [vmem:[#allocation8 + $0xb0] sm:$0xf0]  ;;  %v1000_v3 = vld [vmem:[#allocation8 + $0x90] sm:$0xf]  ;;  %v116_v15 = vld [vmem:[%s1673_s1] sm:$0xff] }
  0x18   :  { %111 = vst.msk [vmem:[#allocation2 + $0x18] sm:$0xff] %vm108_vm0, %v1399_v0  ;;  %v1013_v4 = vor.u32 %v1177_v2, %v1012_v1  ;;  %v1174_v5 = vld [vmem:[#allocation8 + $0x98] sm:$0xf0]  ;;  %v1036_v7 = vld [vmem:[#allocation8 + $0xd8] sm:$0xf]  ;;  %v1481_v17 = vld [vmem:[#allocation3] sm:$0xff] }
  0x19   :  { %107 = vst [vmem:[#allocation2] sm:$0xff] %v1399_v0  ;;  %v1001_v6 = vor.u32 %v1174_v5, %v1000_v3  ;;  %v1183_v8 = vld [vmem:[#allocation8 + $0xe0] sm:$0xf0]  ;;  %v988_v9 = vld [vmem:[#allocation8 + $0x78] sm:$0xf]  ;;  %v117_v29 = vld [vmem:[%s1673_s1 + $0x8] sm:$0xff] }
  0x1a   :  { %113 = vst.msk [vmem:[#allocation2 + $0x28] sm:$0xff] %vm108_vm0, %v1399_v0  ;;  %349 = vmatpush.bf16.msra.mxu0 %v1013_v4  ;;  %v1171_v10 = vld [vmem:[#allocation8 + $0x80] sm:$0xf0]  ;;  %v1037_v11 = vor.u32 %v1183_v8, %v1036_v7  ;;  %v1024_v12 = vld [vmem:[#allocation8 + $0xc0] sm:$0xf]  ;;  %v1192_v39 = vld [vmem:[%s1677_s5 + $0x38] sm:$0xff] }
  0x1b   :  { %v1180_v13 = vld [vmem:[#allocation8 + $0xc8] sm:$0xf0]  ;;  %v989_v16 = vor.u32 %v1171_v10, %v988_v9  ;;  %118 = vst.msk [vmem:[#allocation2 + $0x18] sm:$0xff] %vm108_vm0, %v116_v15  ;;  %v976_v18 = vld [vmem:[#allocation8 + $0x60] sm:$0xf]  ;;  %v1191_v42 = vld [vmem:[%s1677_s5 + $0x30] sm:$0xff] }
  0x1c   :  { %373 = vmatpush.bf16.msra.mxu1 %v1037_v11  ;;  %v1025_v14 = vor.u32 %v1180_v13, %v1024_v12  ;;  %v1168_v19 = vld [vmem:[#allocation8 + $0x68] sm:$0xf0]  ;;  %115 = vst.msk [vmem:[#allocation2] sm:$0xff] %vm108_vm0, %v1481_v17  ;;  %v964_v21 = vld [vmem:[#allocation8 + $0x48] sm:$0xf]  ;;  %v1400_v43 = vmov 0.0|0.0  }
  0x1d   :  { %v977_v20 = vor.u32 %v1168_v19, %v976_v18  ;;  %v1165_v22 = vld [vmem:[#allocation8 + $0x50] sm:$0xf0]  ;;  %v952_v27 = vld [vmem:[#allocation8 + $0x30] sm:$0xf]  ;;  %v1162_v28 = vld [vmem:[#allocation8 + $0x38] sm:$0xf0] }
  0x1e   :  { %350 = vmatpush.bf16.msra.mxu0 %v1001_v6  ;;  %v121_v23 = vld [vmem:[#allocation2 + $0x8] sm:$0xff]  ;;  %v965_v25 = vor.u32 %v1165_v22, %v964_v21  ;;  %119 = vst.msk [vmem:[#allocation2 + $0x28] sm:$0xff] %vm108_vm0, %v117_v29  ;;  %v953_v30 = vor.u32 %v1162_v28, %v952_v27  ;;  %v940_v31 = vld [vmem:[#allocation8 + $0x18] sm:$0xf]  ;;  %v1159_v32 = vld [vmem:[#allocation8 + $0x20] sm:$0xf0] }
  0x1f   :  { %v941_v33 = vor.u32 %v1159_v32, %v940_v31  ;;  %v928_v34 = vld [vmem:[#allocation8] sm:$0xf]  ;;  %v1156_v35 = vld [vmem:[#allocation8 + $0x8] sm:$0xf0]  ;;  %v1188_v46 = vld [vmem:[%s1677_s5 + $0x18] sm:$0xff]  ;;  %vm622_vm1 = vcmask 785408  }
  0x20   :  { %374 = vmatpush.bf16.msra.mxu1 %v1025_v14  ;;  %v929_v37 = vor.u32 %v1156_v35, %v928_v34  ;;  %v1190_v44 = vld [vmem:[%s1677_s5 + $0x28] sm:$0xff]  ;;  %v1189_v45 = vld [vmem:[%s1677_s5 + $0x20] sm:$0xff]  ;;  %v1187_v47 = vld [vmem:[%s1677_s5 + $0x10] sm:$0xff]  ;;  %vm700_vm2 = vcmask 130048   ;;  %s1401_s0 = smov 1.0   ;;  %vm881_vm11 = vcmask 7168  }
  0x21   :  { %v1186_v48 = vld [vmem:[%s1677_s5 + $0x8] sm:$0xff]  ;;  %v1185_v49 = vld [vmem:[%s1677_s5] sm:$0xff]  ;;  %v1525_v52 = vld [vmem:[#allocation9] sm:$0x77]  ;;  %s913_s25 = sshll.u32 %s1682_s10, 4  ;;  %s1403_s27 = smov [#allocation12]   ;;  %s914_s25 = int_to_ptr.hbm [resolvable:$true] %s913_s25 }
  0x22   :  { %351 = vmatpush.bf16.msra.mxu0 %v989_v16  ;;  %v123_v24 = vld [vmem:[#allocation2 + $0x18] sm:$0xff]  ;;  %v174_v53 = vperm.slane %v1525_v52, 0  ;;  %v1038_v58 = vld [vmem:[#allocation8 + $0xe4] sm:$0xf0]  ;;  %v1179_v59 = vld [vmem:[#allocation8 + $0xc4] sm:$0xf] }
  0x23   :  { %v1485_v26 = vpack.c.bf16 %v123_v24, %v121_v23  ;;  %v120_v38 = vld [vmem:[#allocation2] sm:$0xff]  ;;  %v1182_v57 = vld [vmem:[#allocation8 + $0xdc] sm:$0xf]  ;;  %v1026_v61 = vld [vmem:[#allocation8 + $0xcc] sm:$0xf0] }
  0x24   :  { %v1498_v41 = vpack.c.bf16 0.0, %v120_v38  ;;  %v1530_v55 = vperm.slane %v174_v53, 0  ;;  %v1041_v60 = vor.u32 %v1182_v57, %v1038_v58  ;;  %v1020_v62 = vld [vmem:[#allocation8 + $0xb0] sm:$0xf]  ;;  %v1178_v63 = vld [vmem:[#allocation8 + $0xb8] sm:$0xf0]  ;;  %v1029_v4 = vor.u32 %v1179_v59, %v1026_v61 }
  0x25   :  { %1046 = vmatmul.msk.bf16.vlgmr.msra.gmra.mxu1 %vm108_vm0, %v1485_v26  ;;  %v125_v36 = vld [vmem:[#allocation2 + $0x28] sm:$0xff]  ;;  %v1021_v0 = vor.u32 %v1178_v63, %v1020_v62  ;;  %v1014_v2 = vld [vmem:[#allocation8 + $0xb4] sm:$0xf0]  ;;  %v1175_v6 = vld [vmem:[#allocation8 + $0xa0] sm:$0xf0] }
  0x26   :  { %352 = vmatpush.bf16.msra.mxu0 %v977_v20  ;;  %v1496_v40 = vpack.c.bf16 %v125_v36, %v125_v36  ;;  %v1176_v1 = vld [vmem:[#allocation8 + $0xac] sm:$0xf]  ;;  %v1008_v3 = vld [vmem:[#allocation8 + $0x98] sm:$0xf]  ;;  %407 = vmatpush.bf16.msra.mxu3 %v1041_v60  ;;  %v1173_v7 = vld [vmem:[#allocation8 + $0x94] sm:$0xf] }
  0x27   :  { %v1017_v5 = vor.u32 %v1176_v1, %v1014_v2  ;;  %v1002_v8 = vld [vmem:[#allocation8 + $0x9c] sm:$0xf0]  ;;  %417 = vmatpush.bf16.msrb.mxu1 %v1021_v0  ;;  %v1009_v10 = vor.u32 %v1175_v6, %v1008_v3  ;;  %v1172_v13 = vld [vmem:[#allocation8 + $0x88] sm:$0xf0]  ;;  %v1170_v15 = vld [vmem:[#allocation8 + $0x7c] sm:$0xf] }
  0x28   :  { %v1005_v11 = vor.u32 %v1173_v7, %v1002_v8  ;;  %v996_v12 = vld [vmem:[#allocation8 + $0x80] sm:$0xf]  ;;  %v990_v16 = vld [vmem:[#allocation8 + $0x84] sm:$0xf0]  ;;  %v1169_v24 = vld [vmem:[#allocation8 + $0x70] sm:$0xf0] }
  0x29   :  { %385 = vmatpush.bf16.msra.mxu2 %v1017_v5  ;;  %v997_v21 = vor.u32 %v1172_v13, %v996_v12  ;;  %v984_v22 = vld [vmem:[#allocation8 + $0x68] sm:$0xf]  ;;  %v993_v23 = vor.u32 %v1170_v15, %v990_v16  ;;  %v1184_v27 = vld [vmem:[#allocation8 + $0xe8] sm:$0xf0]  ;;  %v1167_v29 = vld [vmem:[#allocation8 + $0x64] sm:$0xf] }
  0x2a   :  { %353 = vmatpush.bf16.msra.mxu0 %v965_v25  ;;  %408 = vmatpush.bf16.msra.mxu3 %v1029_v4  ;;  %v1044_v25 = vld [vmem:[#allocation8 + $0xe0] sm:$0xf]  ;;  %v1032_v32 = vld [vmem:[#allocation8 + $0xc8] sm:$0xf]  ;;  %v985_v36 = vor.u32 %v1169_v24, %v984_v22  ;;  %v972_v38 = vld [vmem:[#allocation8 + $0x50] sm:$0xf] }
  0x2b   :  { %418 = vmatpush.bf16.msrb.mxu1 %v1009_v10  ;;  %v1045_v31 = vor.u32 %v1184_v27, %v1044_v25  ;;  %v1163_v53 = vld [vmem:[#allocation8 + $0x40] sm:$0xf0]  ;;  %v954_v57 = vld [vmem:[#allocation8 + $0x3c] sm:$0xf0]  ;;  %v1160_v62 = vld [vmem:[#allocation8 + $0x28] sm:$0xf0] }
  0x2c   :  { %v948_v61 = vld [vmem:[#allocation8 + $0x20] sm:$0xf]  ;;  %v1158_v63 = vld [vmem:[#allocation8 + $0x1c] sm:$0xf]  ;;  %v942_v0 = vld [vmem:[#allocation8 + $0x24] sm:$0xf0] }
  0x2d   :  { %386 = vmatpush.bf16.msra.mxu2 %v1005_v11  ;;  %1048 = vmatmul.msk.bf16.vlgmr.msra.gmra.mxu3 %vm108_vm0, %v1485_v26  ;;  %v949_v2 = vor.u32 %v1160_v62, %v948_v61  ;;  %v945_v3 = vor.u32 %v1158_v63, %v942_v0  ;;  %v936_v4 = vld [vmem:[#allocation8 + $0x8] sm:$0xf]  ;;  %v1157_v5 = vld [vmem:[#allocation8 + $0x10] sm:$0xf0]  ;;  %v1155_v6 = vld [vmem:[#allocation8 + $0x4] sm:$0xf] }
  0x2e   :  { %354 = vmatpush.bf16.msra.mxu0 %v953_v30  ;;  %v978_v30 = vld [vmem:[#allocation8 + $0x6c] sm:$0xf0]  ;;  %440 = vmatpush.bf16.msrb.mxu3 %v1045_v31  ;;  %v1203_v7 = vld [vmem:[%s1678_s6 + $0x54] sm:$0xf]  ;;  %v1128_v8 = vld [vmem:[%s1678_s6 + $0x58] sm:$0xf0]  ;;  %v937_v12 = vor.u32 %v1157_v5, %v936_v4 }
  0x2f   :  { %419 = vmatpush.bf16.msrb.mxu1 %v997_v21  ;;  %v1204_v10 = vld [vmem:[%s1678_s6 + $0x54] sm:$0xf0]  ;;  %v1201_v16 = vld [vmem:[%s1678_s6 + $0x44] sm:$0xf]  ;;  %v1199_v24 = vld [vmem:[%s1678_s6 + $0x34] sm:$0xf] }
  0x30   :  { %v1198_v27 = vld [vmem:[%s1678_s6 + $0x24] sm:$0xf0]  ;;  %v175_v0 = vperm.slane %v1525_v52, 4  ;;  %v131_v5 = vld [vmem:[#allocation9 + $0x8] sm:$0x7] }
  0x31   :  { %387 = vmatpush.bf16.msra.mxu2 %v993_v23  ;;  %v1110_v23 = vld [vmem:[%s1678_s6 + $0x30] sm:$0xf] }
  0x32   :  { %355 = vmatpush.bf16.msra.mxu0 %v941_v33  ;;  %v1181_v33 = vld [vmem:[#allocation8 + $0xd0] sm:$0xf0] }
  0x33   :  { %420 = vmatpush.bf16.msrb.mxu1 %v985_v36  ;;  %v1096_v36 = vld [vmem:[%s1678_s6 + $0x18] sm:$0xf0] }
  0x35   :  { %1047 = vmatmul.msk.bf16.gmra.mxu1 %vm108_vm0, %v1496_v40 }
  0x36   :  { %356 = vmatpush.bf16.msra.mxu0 %v929_v37  ;;  %v981_v37 = vor.u32 %v1167_v29, %v978_v30  ;;  %v1104_v30 = vld [vmem:[%s1678_s6 + $0x28] sm:$0xf0] }
  0x38   :  { %388 = vmatpush.bf16.msra.mxu2 %v981_v37 }
  0x39   :  { %357 = vmatmul.bf16.vlgmr.msra.gmra.mxu0 %v1498_v41 }
  0x3a   :  { %521 = vmatpush.bf16.msrb.mxu0 %v1192_v39  ;;  %v1166_v39 = vld [vmem:[#allocation8 + $0x58] sm:$0xf0] }
  0x3d   :  { %1049 = vmatmul.msk.bf16.gmra.mxu3 %vm108_vm0, %v1496_v40 }
  0x3e   :  { %522 = vmatpush.bf16.msrb.mxu0 %v1191_v42  ;;  %v1033_v42 = vor.u32 %v1181_v33, %v1032_v32  ;;  %v1094_v32 = vld [vmem:[%s1678_s6 + $0x10] sm:$0xf]  ;;  %v1196_v33 = vld [vmem:[%s1678_s6 + $0x14] sm:$0xf0] }
  0x40   :  { %441 = vmatpush.bf16.msrb.mxu3 %v1033_v42  ;;  %v1193_v42 = vld [vmem:[%s1678_s6 + $0x4] sm:$0xf] }
  0x42   :  { %523 = vmatpush.bf16.msrb.mxu0 %v1190_v44 }
  0x46   :  { %524 = vmatpush.bf16.msrb.mxu0 %v1189_v45  ;;  %v1164_v45 = vld [vmem:[#allocation8 + $0x4c] sm:$0xf] }
  0x49   :  { %362 = vmatmul.bf16.gmra.mxu0 %v1400_v43 }
  0x4a   :  { %525 = vmatpush.bf16.msrb.mxu0 %v1188_v46  ;;  %v966_v46 = vld [vmem:[#allocation8 + $0x54] sm:$0xf0] }
  0x4d   :  { %1050 = vmatmul.msk.bf16.vlgmr.msrb.gmra.mxu3 %vm108_vm0, %v1485_v26 }
  0x4e   :  { %526 = vmatpush.bf16.msrb.mxu0 %v1187_v47 }
  0x52   :  { %527 = vmatpush.bf16.msrb.mxu0 %v1186_v48 }
  0x56   :  { %528 = vmatpush.bf16.msrb.mxu0 %v1185_v49  ;;  %v973_v49 = vor.u32 %v1166_v39, %v972_v38  ;;  %v1086_v38 = vld [vmem:[%s1678_s6] sm:$0xf]  ;;  %v1194_v39 = vld [vmem:[%s1678_s6 + $0x4] sm:$0xf0] }
  0x58   :  { %421 = vmatpush.bf16.msrb.mxu1 %v973_v49  ;;  %v472_v49 = vperm.slane %v1525_v52, 1 }
  0x5d   :  { %1051 = vmatmul.msk.bf16.gmra.mxu3 %vm108_vm0, %v1496_v40  ;;  %v1102_v40 = vld [vmem:[%s1678_s6 + $0x20] sm:$0xf] }
  0x5e   :  { %v1103_v29 = vor.u32 %v1198_v27, %v1102_v40  ;;  %v556_v27 = vperm.slane %v1525_v52, 2 }
  0xa2   :  { %v376_v50 = vpop.f32.mrf.mxu1 }
  0xaa   :  { %v378_v51 = vpop.f32.mrf.mxu1 }
  0xb2   :  { %v1528_v54 = vpop.f32.mrf.mxu1 }
  0xb6   :  { %v358_v56 = vpop.f32.mrf.mxu0 }
  0xb7   :  { %v359_v9 = vadd.f32 %v358_v56, %v1530_v55  ;;  %v1161_v56 = vld [vmem:[#allocation8 + $0x34] sm:$0xf] }
  0xb8   :  { %v957_v60 = vor.u32 %v1161_v56, %v954_v57 }
  0xb9   :  { %v377_v19 = vadd.f32 %v376_v50, %v359_v9  ;;  %v969_v50 = vor.u32 %v1164_v45, %v966_v46  ;;  %v1126_v9 = vld [vmem:[%s1678_s6 + $0x50] sm:$0xf]  ;;  %v1088_v45 = vld [vmem:[%s1678_s6 + $0x8] sm:$0xf0] }
  0xba   :  { %v383_v14 = vpop.f32.mrf.mxu1  ;;  %v1127_v15 = vor.u32 %v1204_v10, %v1126_v9  ;;  %v1091_v46 = vor.u32 %v1193_v42, %v1088_v45  ;;  %v176_v9 = vperm.slane %v131_v5, 0  ;;  %v1206_v42 = vld [vmem:[%s1680_s8 + $0x8] sm:$0xff] }
  0xbb   :  { %v451_v34 = vmax.f32 %v377_v19, 0.0  ;;  %389 = vmatpush.bf16.msra.mxu2 %v969_v50  ;;  %v1131_v14 = vor.u32 %v1203_v7, %v1128_v8  ;;  %v1118_v19 = vld [vmem:[%s1678_s6 + $0x40] sm:$0xf] }
  0xbe   :  { %v360_v18 = vpop.f32.mrf.mxu0 }
  0xbf   :  { %v361_v20 = vadd.f32 %v360_v18, %v1530_v55  ;;  %390 = vmatpush.bf16.msra.mxu2 %v957_v60  ;;  %v1120_v18 = vld [vmem:[%s1678_s6 + $0x48] sm:$0xf0] }
  0xc0   :  { %v1123_v21 = vor.u32 %v1201_v16, %v1120_v18 }
  0xc1   :  { %v379_v28 = vadd.f32 %v378_v51, %v361_v20  ;;  %v960_v51 = vld [vmem:[#allocation8 + $0x38] sm:$0xf]  ;;  %v1202_v20 = vld [vmem:[%s1678_s6 + $0x44] sm:$0xf0] }
  0xc2   :  { %v961_v59 = vor.u32 %v1163_v53, %v960_v51  ;;  %v1119_v22 = vor.u32 %v1202_v20, %v1118_v19 }
  0xc3   :  { %v452_v35 = vmax.f32 %v379_v28, 0.0  ;;  %391 = vmatpush.bf16.msra.mxu2 %v945_v3  ;;  %v1197_v28 = vld [vmem:[%s1678_s6 + $0x24] sm:$0xf] }
  0xc4   :  { %422 = vmatpush.bf16.msrb.mxu1 %v961_v59  ;;  %v1107_v31 = vor.u32 %v1197_v28, %v1104_v30 }
  0xc5   :  { %v454_v44 = vpack.c.bf16 %v452_v35, %v451_v34  ;;  %v1195_v34 = vld [vmem:[%s1678_s6 + $0x14] sm:$0xf]  ;;  %v1095_v35 = vor.u32 %v1196_v33, %v1094_v32 }
  0xc6   :  { %v363_v47 = vpop.f32.mrf.mxu0  ;;  %v1099_v37 = vor.u32 %v1195_v34, %v1096_v36 }
  0xc7   :  { %529 = vmatmul.bf16.vlgmr.msrb.gmra.mxu0 %v454_v44  ;;  %v364_v48 = vadd.f32 %v363_v47, %v1530_v55  ;;  %v1087_v44 = vor.u32 %v1194_v39, %v1086_v38 }
  0xc8   :  { %423 = vmatpush.bf16.msrb.mxu1 %v949_v2 }
  0xc9   :  { %v382_v58 = vadd.f32 %v1528_v54, %v364_v48  ;;  %v930_v54 = vld [vmem:[#allocation8 + $0xc] sm:$0xf0]  ;;  %v410_v48 = vpop.f32.mrf.mxu3 }
  0xca   :  { %v933_v13 = vor.u32 %v1155_v6, %v930_v54 }
  0xcb   :  { %v453_v1 = vmax.f32 %v382_v58, 0.0 }
  0xcc   :  { %424 = vmatpush.bf16.msrb.mxu1 %v937_v12  ;;  %392 = vmatpush.bf16.msra.mxu2 %v933_v13 }
  0xcd   :  { %v455_v11 = vpack.c.bf16 %v453_v1, %v453_v1  ;;  %v181_v1 = vperm.slane %v175_v0, 0  ;;  %v1646_v0 = vld [vmem:[#allocation11] sm:$0xf] }
  0xce   :  { %v365_v55 = vpop.f32.mrf.mxu0 }
  0xcf   :  { %425 = vmatmul.bf16.vlgmr.msrb.gmra.mxu1 %v1498_v41  ;;  %393 = vmatmul.bf16.vlgmr.msra.gmra.mxu2 %v1498_v41  ;;  %v1200_v41 = vld [vmem:[%s1678_s6 + $0x34] sm:$0xf0] }
  0xd0   :  { %647 = vmatpush.bf16.msra.mxu1 %v1131_v14  ;;  %631 = vmatpush.bf16.msrb.mxu2 %v1127_v15  ;;  %v1111_v26 = vor.u32 %v1200_v41, %v1110_v23 }
  0xd1   :  { %v412_v53 = vpop.f32.mrf.mxu3 }
  0xd2   :  { %v1207_v53 = vld [vmem:[%s1680_s8 + $0x10] sm:$0xff] }
  0xd4   :  { %648 = vmatpush.bf16.msra.mxu1 %v1123_v21  ;;  %632 = vmatpush.bf16.msrb.mxu2 %v1119_v22 }
  0xd7   :  { %534 = vmatmul.bf16.gmra.mxu0 %v455_v11  ;;  %v182_v11 = vperm.slane %v176_v9, 0 }
  0xd8   :  { %633 = vmatpush.bf16.msrb.mxu2 %v1111_v26  ;;  %v557_v26 = vperm.slane %v1525_v52, 6 }
  0xd9   :  { %v414_v61 = vpop.f32.mrf.mxu3 }
  0xda   :  { %v561_v40 = vperm.slane %v557_v26, 2 }
  0xdc   :  { %634 = vmatpush.bf16.msrb.mxu2 %v1103_v29  ;;  %v560_v29 = vperm.slane %v556_v27, 2 }
  0xdf   :  { %429 = vmatmul.bf16.gmra.mxu1 %v1400_v43  ;;  %397 = vmatmul.bf16.gmra.mxu2 %v1400_v43  ;;  %v1112_v43 = vld [vmem:[%s1678_s6 + $0x38] sm:$0xf0] }
  0xe0   :  { %v1115_v25 = vor.u32 %v1199_v24, %v1112_v43  ;;  %635 = vmatpush.bf16.msrb.mxu2 %v1095_v35 }
  0xe1   :  { %v415_v3 = vpop.f32.mrf.mxu3 }
  0xe2   :  { %649 = vmatpush.bf16.msra.mxu1 %v1115_v25 }
  0xe4   :  { %636 = vmatpush.bf16.msrb.mxu2 %v1087_v44 }
  0xe6   :  { %650 = vmatpush.bf16.msra.mxu1 %v1107_v31 }
  0xe9   :  { %v443_v10 = vpop.f32.mrf.mxu3 }
  0xea   :  { %651 = vmatpush.bf16.msra.mxu1 %v1099_v37 }
  0xee   :  { %652 = vmatpush.bf16.msra.mxu1 %v1091_v46  ;;  %v1205_v46 = vld [vmem:[%s1680_s8] sm:$0xff] }
  0xf1   :  { %v444_v15 = vpop.f32.mrf.mxu3 }
  0xf9   :  { %v447_v21 = vpop.f32.mrf.mxu3 }
 0x101   :  { %v449_v41 = vpop.f32.mrf.mxu3 }
 0x144   :  { %v530_v47 = vpop.f32.mrf.mxu0 }
 0x145   :  { %v531_v50 = vadd.f32 %v530_v47, %v472_v49 }
 0x147   :  { %v539_v57 = vmax.f32 %v531_v50, 0.0 }
 0x14c   :  { %v532_v51 = vpop.f32.mrf.mxu0  ;;  %v426_v63 = vpop.f32.mrf.mxu1 }
 0x14d   :  { %v533_v56 = vadd.f32 %v532_v51, %v472_v49  ;;  %v1208_v51 = vld [vmem:[%s1680_s8 + $0x18] sm:$0xff] }
 0x14e   :  { %836 = vmatpush.bf16.msra.mxu0 %v1208_v51 }
 0x14f   :  { %v540_v58 = vmax.f32 %v533_v56, 0.0  ;;  %v683_v56 = vld [vmem:[#allocation6] sm:$0xff] }
 0x150   :  { %v696_v9 = vsub.f32 1.0, %v683_v56 }
 0x151   :  { %v542_v59 = vpack.c.bf16 %v540_v58, %v539_v57  ;;  %v701_v58 = vsel %vm700_vm2, %v683_v56, 0.0 }
 0x152   :  { %v394_v4 = vpop.f32.mrf.mxu2  ;;  %837 = vmatpush.bf16.msra.mxu0 %v1207_v53  ;;  %702 = vadd.xlane.f32.xlu0 %v701_v58 }
 0x153   :  { %1132 = vmatmul.msk.bf16.vlgmr.msrb.gmra.mxu2 %vm622_vm1, %v542_v59  ;;  %1134 = vmatmul.msk.bf16.vlgmr.msra.gmra.mxu1 %vm622_vm1, %v542_v59  ;;  %v395_v54 = vadd.f32 %v394_v4, %v181_v1 }
 0x154   :  { %v535_v60 = vpop.f32.mrf.mxu0  ;;  %v427_v7 = vpop.f32.mrf.mxu1 }
 0x155   :  { %v536_v62 = vadd.f32 %v535_v60, %v472_v49  ;;  %v411_v8 = vadd.f32 %v410_v48, %v395_v54  ;;  %v428_v14 = vadd.f32 %v427_v7, %v182_v11  ;;  %v770_v49 = vld [vmem:[%s1675_s3] sm:$0xff] }
 0x156   :  { %v772_v50 = vpack.c.bf16 %v1481_v17, %v770_v49 }
 0x157   :  { %v541_v55 = vmax.f32 %v536_v62, 0.0  ;;  %v445_v16 = vadd.f32 %v444_v15, %v428_v14 }
 0x159   :  { %v543_v6 = vpack.c.bf16 %v541_v55, %v541_v55 }
 0x15a   :  { %v396_v12 = vpop.f32.mrf.mxu2 }
 0x15c   :  { %v537_v2 = vpop.f32.mrf.mxu0  ;;  %v430_v13 = vpop.f32.mrf.mxu1 }
 0x15d   :  { %v431_v20 = vadd.f32 %v430_v13, %v182_v11  ;;  %v777_v2 = vperm.slane %v1646_v0, 0 }
 0x15f   :  { %v448_v22 = vadd.f32 %v447_v21, %v431_v20 }
 0x162   :  { %v398_v18 = vpop.f32.mrf.mxu2 }
 0x163   :  { %1133 = vmatmul.msk.bf16.gmra.mxu2 %vm622_vm1, %v543_v6  ;;  %1135 = vmatmul.msk.bf16.gmra.mxu1 %vm622_vm1, %v543_v6 }
 0x164   :  { %v432_v19 = vpop.f32.mrf.mxu1 }
 0x16a   :  { %v399_v23 = vpop.f32.mrf.mxu2 }
 0x1c5   :  { %v703_v21 = vpop.xlane.xlu0 %702 }
 0x1d0   :  { %v654_v24 = vpop.f32.mrf.mxu1 }
 0x1d6   :  { %v638_v43 = vpop.f32.mrf.mxu2 }
 0x1d7   :  { %v639_v34 = vadd.f32 %v638_v43, %v560_v29 }
 0x1d8   :  { %v655_v25 = vpop.f32.mrf.mxu1 }
 0x1d9   :  { %v656_v28 = vadd.f32 %v655_v25, %v561_v40  ;;  %v662_v38 = vmax.f32 %v639_v34, 0.0  ;;  %v814_v25 = vperm.slane %v1646_v0, 1 }
 0x1db   :  { %v663_v32 = vmax.f32 %v656_v28, 0.0  ;;  %v665_v52 = vadd.f32 %v662_v38, %v411_v8  ;;  %v846_v28 = vperm.slane %v1646_v0, 2 }
 0x1dd   :  { %v666_v36 = vadd.f32 %v663_v32, %v445_v16  ;;  %v668_v47 = vpack.c.bf16 %v665_v52, %v665_v52 }
 0x1de   :  { %v640_v30 = vpop.f32.mrf.mxu2 }
 0x1e0   :  { %v658_v31 = vpop.f32.mrf.mxu1 }
 0x1e1   :  { %v659_v33 = vadd.f32 %v658_v31, %v561_v40 }
 0x1e3   :  { %v664_v35 = vmax.f32 %v659_v33, 0.0 }
 0x1e5   :  { %v667_v37 = vadd.f32 %v664_v35, %v448_v22  ;;  %v704_v22 = vrot.slane %v703_v21, 4 }
 0x1e6   :  { %v642_v39 = vpop.f32.mrf.mxu2 }
 0x1e7   :  { %v669_v44 = vpack.c.bf16 %v667_v37, %v666_v36  ;;  %v705_v23 = vadd.f32 %v704_v22, %v703_v21 }
 0x1e8   :  { %v660_v45 = vpop.f32.mrf.mxu1 }
 0x1e9   :  { %677 = vmatpush.bf16.xpose.msra.mxu3 %v669_v44  ;;  %v706_v41 = vrot.slane %v705_v23, 2 }
 0x1eb   :  { %v707_v24 = vadd.f32 %v706_v41, %v705_v23 }
 0x1ed   :  { %v708_v26 = vrot.slane %v707_v24, 1 }
 0x1ee   :  { %v643_v48 = vpop.f32.mrf.mxu2 }
 0x1ef   :  { %v709_v43 = vadd.f32 %v708_v26, %v707_v24 }
 0x1f0   :  { %678 = vmatmul.bf16.vlgmr.msra.gmra.mxu3 %v668_v47 }
 0x1f1   :  { %799 = vmatpush.bf16.msrb.mxu3 %v1206_v42  ;;  %1209 = vpush %v709_v43  ;;  %v855_v42 = vperm.slane %v1646_v0, 3 }
 0x1f5   :  { %800 = vmatpush.bf16.msrb.mxu3 %v1205_v46 }
 0x200   :  { %1145 = vmatmul.msk.bf16.vlgmr.msrb.gmra.mxu3 %vm108_vm0, %v772_v50 }
 0x222   :  { %s1210_s3 = spop %1209 }
 0x223   :  { %s711_s8 = ssub.f32 128.0, %s1210_s3  ;;  %s750_s15 = smax.f32 %s1401_s0, %s1210_s3 }
 0x224   :  { %v751_v38 = vstv %s750_s15 }
 0x225   :  { %s722_s14 = smax.f32 %s1401_s0, %s711_s8  ;;  %vm757_vm5 = vweird.f32 %v751_v38 }
 0x226   :  { %v723_v37 = vstv %s722_s14 }
 0x227   :  { %vm729_vm3 = vweird.f32 %v723_v37 }
 0x273   :  { %v679_v57 = vpop.f32.mrf.mxu3 }
 0x274   :  { %v686_v59 = vand.u32 2147483647, %v679_v57  ;;  %v684_v1 = vsub.f32 0.0, %v679_v57 }
 0x276   :  { %v687_v17 = vsub.f32 0.0, %v686_v59  ;;  %v685_v4 = vmax.f32 %v684_v1, 0.0 }
 0x278   :  { %v688_v60 = vmul.f32 1.442695, %v687_v17 }
 0x27a   :  { %1234 = vpow2.f32 %v688_v60 }
 0x27b   :  { %v681_v61 = vpop.f32.mrf.mxu3 }
 0x280   :  { %v1235_v62 = vpop.eup %1234 }
 0x281   :  { %v690_v63 = vadd.f32 1.0, %v1235_v62 }
 0x283   :  { %1236 = vlog2.f32 %v690_v63  ;;  %v802_v55 = vpop.f32.mrf.mxu3 }
 0x284   :  { %v803_v6 = vadd.f32 %v802_v55, %v777_v2  ;;  %1238 = vrcp.f32 %v723_v37 }
 0x285   :  { %1240 = vrcp.f32 %v751_v38 }
 0x286   :  { %v807_v11 = vmax.f32 %v803_v6, 0.0 }
 0x289   :  { %v1237_v3 = vpop.eup %1236 }
 0x28a   :  { %v692_v5 = vmul.f32 0.6931472, %v1237_v3  ;;  %v1239_v39 = vpop.eup %1238 }
 0x28b   :  { %v804_v54 = vpop.f32.mrf.mxu3  ;;  %v1241_v45 = vpop.eup %1240  ;;  %v725_v52 = vmul.f32 %v1239_v39, %v723_v37  ;;  %vm730_vm4 = vweird.f32 %v1239_v39 }
 0x28c   :  { %v693_v7 = vadd.f32 %v692_v5, %v685_v4  ;;  %v805_v8 = vadd.f32 %v804_v54, %v777_v2  ;;  %v753_v49 = vmul.f32 %v1241_v45, %v751_v38  ;;  %v735_v2 = vand.u32 2147483648, %v723_v37  ;;  %vm1657_vm7 = vmor %vm729_vm3, %vm730_vm4 }
 0x28d   :  { %v726_v50 = vsub.f32 1.0, %v725_v52  ;;  %v733_v4 = vand.u32 2147483647, %v723_v37  ;;  %vm758_vm6 = vweird.f32 %v1241_v45 }
 0x28e   :  { %v697_v10 = vadd.f32 %v693_v7, %v679_v57  ;;  %v808_v12 = vmax.f32 %v805_v8, 0.0  ;;  %v694_v13 = vsub.f32 0.6931472, %v693_v7  ;;  %v763_v7 = vand.u32 2147483648, %v751_v38  ;;  %vm1661_vm8 = vmor %vm757_vm5, %vm758_vm6 }
 0x28f   :  { %v727_v57 = vmul.f32 %v1239_v39, %v726_v50  ;;  %vm734_vm9 = vcmp.eq.f32.partialorder %v733_v4, 8.507059e+37 }
 0x290   :  { %v1136_v14 = vadd.f32 -0.6931472, %v697_v10  ;;  %v809_v15 = vpack.c.bf16 %v808_v12, %v807_v11  ;;  %v695_v16 = vmul.f32 %v694_v13, %v683_v56  ;;  %v754_v56 = vsub.f32 1.0, %v753_v49 }
 0x291   :  { %v728_v1 = vadd.f32 %v1239_v39, %v727_v57  ;;  %v736_v11 = vor.u32 1.1754944e-38, %v735_v2 }
 0x292   :  { %1154 = vmatmul.msk.bf16.vlgmr.msra.gmra.mxu0 %vm108_vm0, %v809_v15  ;;  %v740_v18 = vsel %vm700_vm2, %v695_v16, 0.0  ;;  %v699_v19 = vmul.f32 %v1136_v14, %v696_v9  ;;  %v755_v62 = vmul.f32 %v1241_v45, %v754_v56  ;;  %v761_v9 = vand.u32 2147483647, %v751_v38 }
 0x293   :  { %741 = vadd.xlane.f32.xlu2 %v740_v18  ;;  %v732_v14 = vsel %vm1657_vm7, %v1239_v39, %v728_v1  ;;  %v764_v18 = vor.u32 1.1754944e-38, %v763_v7 }
 0x294   :  { %v712_v20 = vsel %vm700_vm2, %v699_v19, 0.0  ;;  %v756_v8 = vadd.f32 %v1241_v45, %v755_v62  ;;  %vm762_vm10 = vcmp.eq.f32.partialorder %v761_v9, 8.507059e+37  ;;  %v737_v22 = vsel %vm734_vm9, %v736_v11, %v732_v14 }
 0x296   :  { %v760_v19 = vsel %vm1661_vm8, %v1241_v45, %v756_v8 }
 0x297   :  { %v765_v26 = vsel %vm762_vm10, %v764_v18, %v760_v19 }
 0x306   :  { %v742_v44 = vpop.xlane.xlu2 %741 }
 0x307   :  { %v743_v47 = vrot.slane %v742_v44, 4 }
 0x309   :  { %v744_v53 = vadd.f32 %v743_v47, %v742_v44 }
 0x30b   :  { %v745_v17 = vrot.slane %v744_v53, 2 }
 0x30d   :  { %v746_v54 = vadd.f32 %v745_v17, %v744_v53 }
 0x30f   :  { %v839_v40 = vpop.f32.mrf.mxu0  ;;  %v747_v16 = vrot.slane %v746_v54, 1 }
 0x310   :  { %v840_v27 = vadd.f32 %v839_v40, %v814_v25 }
 0x311   :  { %v748_v24 = vadd.f32 %v747_v16, %v746_v54 }
 0x312   :  { %v844_v29 = vmax.f32 %v840_v27, 0.0 }
 0x314   :  { %v847_v30 = vmul.f32 %v846_v28, %v844_v29 }
 0x316   :  { %v849_v31 = vsel %vm108_vm0, %v847_v30, 0.0 }
 0x317   :  { %v841_v32 = vpop.f32.mrf.mxu0  ;;  %850 = vadd.xlane.f32.xlu1 %v849_v31 }
 0x318   :  { %v842_v33 = vadd.f32 %v841_v32, %v814_v25 }
 0x31a   :  { %v845_v34 = vmax.f32 %v842_v33, 0.0 }
 0x31c   :  { %v848_v35 = vmul.f32 %v846_v28, %v845_v34  ;;  %v1402_v34 = vmov 8.0  }
 0x31e   :  { %v852_v36 = vsel %vm108_vm0, %v848_v35, 0.0 }
 0x31f   :  { %853 = vadd.xlane.f32.xlu0 %v852_v36  ;;  %713 = vadd.xlane.f32.xlu1 %v712_v20 }
 0x38a   :  { %v851_v46 = vpop.xlane.xlu1 %850 }
 0x38b   :  { %v856_v48 = vadd.f32 %v855_v42, %v851_v46 }
 0x38d   :  { %v858_v51 = vmul.f32 0.5, %v856_v48 }
 0x38f   :  { %1242 = vtanh.f32 %v858_v51 }
 0x392   :  { %v854_v58 = vpop.xlane.xlu0 %853  ;;  %v714_v59 = vpop.xlane.xlu1 %713 }
 0x393   :  { %v857_v60 = vadd.f32 %v855_v42, %v854_v58  ;;  %v715_v61 = vrot.slane %v714_v59, 4 }
 0x395   :  { %v1243_v63 = vpop.eup %1242  ;;  %v859_v0 = vmul.f32 0.5, %v857_v60  ;;  %v716_v55 = vadd.f32 %v715_v61, %v714_v59 }
 0x396   :  { %v862_v3 = vadd.f32 1.0, %v1243_v63 }
 0x397   :  { %1244 = vtanh.f32 %v859_v0  ;;  %v717_v5 = vrot.slane %v716_v55, 2 }
 0x398   :  { %v864_v13 = vmul.f32 0.5, %v862_v3 }
 0x399   :  { %v718_v10 = vadd.f32 %v717_v5, %v716_v55 }
 0x39a   :  { %v875_v23 = vadd.f32 1e-05, %v864_v13 }
 0x39b   :  { %v719_v15 = vrot.slane %v718_v10, 1 }
 0x39c   :  { %1246 = vlog2.f32 %v875_v23 }
 0x39d   :  { %v1245_v20 = vpop.eup %1244  ;;  %v720_v21 = vadd.f32 %v719_v15, %v718_v10 }
 0x39e   :  { %v863_v41 = vadd.f32 1.0, %v1245_v20 }
 0x39f   :  { %1211 = vpush %v720_v21 }
 0x3a0   :  { %v865_v43 = vmul.f32 0.5, %v863_v41  ;;  %1213 = vpush %v737_v22 }
 0x3a1   :  { %1215 = vpush %v748_v24 }
 0x3a2   :  { %v872_v25 = vsub.f32 1.0, %v865_v43  ;;  %1217 = vpush %v765_v26  ;;  %v1247_v27 = vpop.eup %1246 }
 0x3a3   :  { %v878_v28 = vmul.f32 0.6931472, %v1247_v27 }
 0x3a4   :  { %v876_v40 = vadd.f32 1e-05, %v872_v25 }
 0x3a5   :  { %v882_v31 = vsel %vm881_vm11, %v878_v28, 0.0 }
 0x3a6   :  { %1248 = vlog2.f32 %v876_v40 }
 0x3a7   :  { %1250 = vrcp.f32 %v1402_v34 }
 0x3ac   :  { %v1249_v29 = vpop.eup %1248 }
 0x3ad   :  { %v880_v30 = vmul.f32 0.6931472, %v1249_v29  ;;  %v1251_v35 = vpop.eup %1250 }
 0x3ae   :  { %v895_v36 = vmul.f32 8.0, %v1251_v35  ;;  %vm899_vm12 = vweird.f32 %v1251_v35 }
 0x3af   :  { %v883_v32 = vsel %vm881_vm11, %v880_v30, 0.0 }
 0x3b0   :  { %v884_v33 = vadd.f32 %v883_v32, %v882_v31  ;;  %v896_v37 = vsub.f32 1.0, %v895_v36 }
 0x3b2   :  { %885 = vadd.xlane.f32.xlu2 %v884_v33  ;;  %v897_v44 = vmul.f32 %v1251_v35, %v896_v37 }
 0x3b4   :  { %v898_v46 = vadd.f32 %v1251_v35, %v897_v44 }
 0x3b6   :  { %v900_v49 = vsel %vm899_vm12, %v1251_v35, %v898_v46 }
 0x3d0   :  { %s1212_s16 = spop %1211 }
 0x3d1   :  { %s1214_s4 = spop %1213 }
 0x3d2   :  { %s1216_s9 = spop %1215  ;;  %s739_s18 = smul.f32 %s1214_s4, %s1212_s16 }
 0x3d3   :  { %s1218_s17 = spop %1217 }
 0x3d4   :  { %s767_s20 = smul.f32 %s1218_s17, %s1216_s9 }
 0x3d6   :  { %s768_s2 = ssub.f32 %s739_s18, %s767_s20 }
 0x425   :  { %v886_v38 = vpop.xlane.xlu2 %885 }
 0x426   :  { %v887_v39 = vrot.slane %v886_v38, 4 }
 0x428   :  { %v888_v42 = vadd.f32 %v887_v39, %v886_v38 }
 0x42a   :  { %v889_v45 = vrot.slane %v888_v42, 2 }
 0x42c   :  { %v890_v52 = vadd.f32 %v889_v45, %v888_v42 }
 0x42e   :  { %v891_v47 = vrot.slane %v890_v52, 1 }
 0x430   :  { %v892_v48 = vadd.f32 %v891_v47, %v890_v52 }
 0x432   :  { %1219 = vpush %v892_v48 }
 0x433   :  { %1221 = vpush %v900_v49 }
 0x463   :  { %s1220_s19 = spop %1219 }
 0x464   :  { %s1222_s1 = spop %1221 }
 0x465   :  { %s902_s21 = smul.f32 %s1222_s1, %s1220_s19 }
 0x467   :  { %s903_s22 = ssub.f32 0.0, %s902_s21 }
 0x469   :  { %s904_s26 = smul.f32 0.1, %s903_s22 }
 0x46b   :  { %s905_s6 = sadd.f32 %s904_s26, %s768_s2 }
 0x46d   :  { %907 = sst [smem:[#allocation12]] %s905_s6 }
 0x46e   :  { %916 = dma.smem_to_hbm %s1403_s27, 16, %s914_s25, [#allocation5]  }
 0x46f   :  { %1390 = dma.done.wait [#allocation5], 16  }
 0x470   :  { %1391 = vsyncadd [#allocation5], 4294967280 }
 0x471   :  { %921 = sfence }
 0x472   :  { %922 = vsyncpa [#allocation4], 1 }
 0x473   :  { %923 = vsyncpa [#allocation7], 1 }
 0x474   :  { %924 = vsyncpa [#allocation10], 1 }
 0x475   :  { %925 = vsyncpa [#allocation5], 1 }

</bundles_post_ra>
